<compile_context>
chip_gen: v5e
topology: v5e:2x2
jax: 0.10.0
libtpu: 0.0.40
codegen_flags: <defaults>
</compile_context>

<pallas_src>
import math

import jax
import jax.numpy as jnp
from jax import lax
from jax.experimental import pallas as pl
from jax.experimental.pallas import tpu as pltpu

EPS = 1e-5  # nn.LayerNorm default eps


# ----------------------------- Pallas kernel ------------------------------

def _mlp_proj_faceid_kernel(x_ref, w1_ref, b1_ref, w2_ref, b2_ref,
                            g_ref, beta_ref, o_ref, *, num_tokens, cross_dim):
    """Fused: Linear+bias -> exact GELU -> Linear+bias -> per-token LayerNorm.

    x_ref : (TM, E)            input rows tile
    w1/b1 : (E, 2E), (1, 2E)   first projection (resident)
    w2/b2 : (2E, T*C), (1, T*C) second projection (resident)
    g/beta: (1, C)             LayerNorm affine params (resident)
    o_ref : (TM, T, C)         output tile
    """
    x = x_ref[...]                                                    # (TM, E)

    # Linear 1 + bias (MXU, f32 accumulate)
    h = jnp.dot(x, w1_ref[...], preferred_element_type=jnp.float32) + b1_ref[...]

    # Exact GELU (nn.GELU default): 0.5 * x * (1 + erf(x / sqrt(2)))
    h = 0.5 * h * (1.0 + lax.erf(h * (1.0 / math.sqrt(2.0))))

    # Linear 2 + bias -> (TM, T*C)
    y = jnp.dot(h, w2_ref[...], preferred_element_type=jnp.float32) + b2_ref[...]

    g = g_ref[...]                                                    # (1, C)
    beta = beta_ref[...]                                              # (1, C)

    # reshape(-1, T, C) + LayerNorm(C): handled as T lane-aligned slices of y,
    # normalized independently and stored into the (TM, T, C) output tile.
    for t in range(num_tokens):
        chunk = y[:, t * cross_dim:(t + 1) * cross_dim]               # (TM, C)
        mu = jnp.mean(chunk, axis=-1, keepdims=True)
        var = jnp.mean((chunk - mu) ** 2, axis=-1, keepdims=True)
        o_ref[:, t, :] = (chunk - mu) * lax.rsqrt(var + EPS) * g + beta


# ------------------------------ JAX wrapper --------------------------------

def mlp_proj_faceid(id_embeds, params, *, num_tokens, block_rows=256,
                    vmem_limit_bytes=None):
    """id_embeds: (B, E) -> (B, num_tokens, cross_attention_dim)."""
    B, E = id_embeds.shape
    H = params["w1"].shape[1]                 # 2*E
    C = params["norm_g"].shape[0]             # cross_attention_dim
    assert params["w2"].shape == (H, num_tokens * C)

    # Row tile: use the whole batch if it is small / not divisible.
    TM = block_rows if (B % block_rows == 0) else B
    grid = (pl.cdiv(B, TM),)

    import functools
    kernel = functools.partial(_mlp_proj_faceid_kernel,
                               num_tokens=num_tokens, cross_dim=C)

    compiler_params = pltpu.CompilerParams(
        dimension_semantics=("parallel",),        # rows shard across TCs (v7x)
        vmem_limit_bytes=vmem_limit_bytes,        # bump for production sizes
    )

    out = pl.pallas_call(
        kernel,
        out_shape=jax.ShapeDtypeStruct((B, num_tokens, C), jnp.float32),
        grid=grid,
        in_specs=[
            pl.BlockSpec((TM, E), lambda i: (i, 0)),              # x rows
            pl.BlockSpec((E, H), lambda i: (0, 0)),               # w1 (resident)
            pl.BlockSpec((1, H), lambda i: (0, 0)),               # b1
            pl.BlockSpec((H, num_tokens * C), lambda i: (0, 0)),  # w2 (resident)
            pl.BlockSpec((1, num_tokens * C), lambda i: (0, 0)),  # b2
            pl.BlockSpec((1, C), lambda i: (0, 0)),               # ln gamma
            pl.BlockSpec((1, C), lambda i: (0, 0)),               # ln beta
        ],
        out_specs=pl.BlockSpec((TM, num_tokens, C), lambda i: (i, 0, 0)),
        compiler_params=compiler_params,
    )(
        id_embeds,
        params["w1"], params["b1"].reshape(1, H),
        params["w2"], params["b2"].reshape(1, num_tokens * C),
        params["norm_g"].reshape(1, C), params["norm_b"].reshape(1, C),
    )
    return out


# -------------------------- deterministic params ---------------------------

def init_params(key, *, cross_attention_dim, id_embeddings_dim, num_tokens):
    E, C, T = id_embeddings_dim, cross_attention_dim, num_tokens
    k1, k2, k3, k4 = jax.random.split(key, 4)

    def nrm(k, shape, scale=0.02):
        return (scale * jax.random.normal(k, shape)).astype(jnp.float32)

    return {
        "w1": nrm(k1, (E, 2 * E)),
        "b1": nrm(k2, (2 * E,)),
        "w2": nrm(k3, (2 * E, C * T)),
        "b2": nrm(k4, (C * T,)),
        "norm_g": jnp.ones((C,), jnp.float32),
        "norm_b": jnp.zeros((C,), jnp.float32),
    }


# -------------------------- pure-JAX reference -----------------------------

def _ref_forward(id_embeds, params, *, num_tokens):
    C = params["norm_g"].shape[0]
    x = id_embeds @ params["w1"] + params["b1"]
    x = jax.nn.gelu(x, approximate=False)
    x = x @ params["w2"] + params["b2"]
    x = x.reshape(-1, num_tokens, C)
    mu = jnp.mean(x, -1, keepdims=True)
    var = jnp.mean((x - mu) ** 2, -1, keepdims=True)
    return (x - mu) / jnp.sqrt(var + EPS) * params["norm_g"] + params["norm_b"]


# ---------------------------------- main -----------------------------------

if __name__ == "__main__":
    # Small config consistent with the module (prod defaults: C=768, E=512, T=4).
    CROSS_ATTENTION_DIM = 128
    ID_EMBEDDINGS_DIM = 64
    NUM_TOKENS = 4
    B = 2

    key = jax.random.PRNGKey(0)
    k_x, k_p = jax.random.split(key, 2)
    id_embeds = jax.random.normal(k_x, (B, ID_EMBEDDINGS_DIM), jnp.float32)
    params = init_params(k_p,
                         cross_attention_dim=CROSS_ATTENTION_DIM,
                         id_embeddings_dim=ID_EMBEDDINGS_DIM,
                         num_tokens=NUM_TOKENS)

    out = mlp_proj_faceid(id_embeds, params, num_tokens=NUM_TOKENS)
    out = jax.block_until_ready(out)

    ref = _ref_forward(id_embeds, params, num_tokens=NUM_TOKENS)
    assert out.shape == (B, NUM_TOKENS, CROSS_ATTENTION_DIM)
    assert jnp.allclose(out, ref, atol=1e-4, rtol=1e-4), "mismatch vs pure-JAX reference"

    print("KERNEL_OK")
</pallas_src>

<mosaic_0001>
module attributes {stable_mosaic.version = 11 : i64} {
  func.func @_mlp_proj_faceid_kernel(%arg0: i32, %arg1: memref<2x64xf32, #tpu.memory_space<vmem>>, %arg2: memref<64x128xf32, #tpu.memory_space<vmem>>, %arg3: memref<1x128xf32, #tpu.memory_space<vmem>>, %arg4: memref<128x512xf32, #tpu.memory_space<vmem>>, %arg5: memref<1x512xf32, #tpu.memory_space<vmem>>, %arg6: memref<1x128xf32, #tpu.memory_space<vmem>>, %arg7: memref<1x128xf32, #tpu.memory_space<vmem>>, %arg8: memref<2x4x128xf32, #tpu.memory_space<vmem>>) attributes {dimension_semantics = [#tpu.dimension_semantics<parallel>], iteration_bounds = array<i64: 1>, scalar_prefetch = 0 : i64, scratch_operands = 0 : i64, tpu.core_type = #tpu.core_type<tc>, window_params = [{transform_indices = @transform_0, window_bounds = array<i64: 2, 64>}, {pipeline_mode = #tpu.pipeline_mode<synchronous>, transform_indices = @transform_1, window_bounds = array<i64: 64, 128>}, {pipeline_mode = #tpu.pipeline_mode<synchronous>, transform_indices = @transform_2, window_bounds = array<i64: 1, 128>}, {pipeline_mode = #tpu.pipeline_mode<synchronous>, transform_indices = @transform_3, window_bounds = array<i64: 128, 512>}, {pipeline_mode = #tpu.pipeline_mode<synchronous>, transform_indices = @transform_4, window_bounds = array<i64: 1, 512>}, {pipeline_mode = #tpu.pipeline_mode<synchronous>, transform_indices = @transform_5, window_bounds = array<i64: 1, 128>}, {pipeline_mode = #tpu.pipeline_mode<synchronous>, transform_indices = @transform_6, window_bounds = array<i64: 1, 128>}, {transform_indices = @transform_7, window_bounds = array<i64: 2, 4, 128>}]} {
    %c0 = arith.constant 0 : index
    %c0_0 = arith.constant 0 : index
    %0 = vector.load %arg1[%c0, %c0_0] : memref<2x64xf32, #tpu.memory_space<vmem>>, vector<2x64xf32>
    %c0_1 = arith.constant 0 : index
    %c0_2 = arith.constant 0 : index
    %1 = vector.load %arg2[%c0_1, %c0_2] : memref<64x128xf32, #tpu.memory_space<vmem>>, vector<64x128xf32>
    %cst = arith.constant dense<0.000000e+00> : vector<2x128xf32>
    %2 = tpu.matmul %0, %1, %cst {dimension_numbers = #tpu.dot_dimension_numbers<[1], [0], [0], [1], [0, 0, 1, 1], [], []>} : vector<2x64xf32>, vector<64x128xf32>, vector<2x128xf32> -> vector<2x128xf32>
    %c0_3 = arith.constant 0 : index
    %c0_4 = arith.constant 0 : index
    %3 = vector.load %arg3[%c0_3, %c0_4] : memref<1x128xf32, #tpu.memory_space<vmem>>, vector<1x128xf32>
    %4 = vector.broadcast %3 : vector<1x128xf32> to vector<2x128xf32>
    %5 = arith.addf %2, %4 : vector<2x128xf32>
    %cst_5 = arith.constant 5.000000e-01 : f32
    %6 = vector.broadcast %cst_5 : f32 to vector<2x128xf32>
    %7 = arith.mulf %6, %5 : vector<2x128xf32>
    %cst_6 = arith.constant 0.707106769 : f32
    %8 = vector.broadcast %cst_6 : f32 to vector<2x128xf32>
    %9 = arith.mulf %5, %8 : vector<2x128xf32>
    %10 = math.erf %9 : vector<2x128xf32>
    %cst_7 = arith.constant 1.000000e+00 : f32
    %11 = vector.broadcast %cst_7 : f32 to vector<2x128xf32>
    %12 = arith.addf %11, %10 : vector<2x128xf32>
    %13 = arith.mulf %7, %12 : vector<2x128xf32>
    %c0_8 = arith.constant 0 : index
    %c0_9 = arith.constant 0 : index
    %14 = vector.load %arg4[%c0_8, %c0_9] : memref<128x512xf32, #tpu.memory_space<vmem>>, vector<128x512xf32>
    %cst_10 = arith.constant dense<0.000000e+00> : vector<2x512xf32>
    %15 = tpu.matmul %13, %14, %cst_10 {dimension_numbers = #tpu.dot_dimension_numbers<[1], [0], [0], [1], [0, 0, 1, 1], [], []>} : vector<2x128xf32>, vector<128x512xf32>, vector<2x512xf32> -> vector<2x512xf32>
    %c0_11 = arith.constant 0 : index
    %c0_12 = arith.constant 0 : index
    %16 = vector.load %arg5[%c0_11, %c0_12] : memref<1x512xf32, #tpu.memory_space<vmem>>, vector<1x512xf32>
    %17 = vector.broadcast %16 : vector<1x512xf32> to vector<2x512xf32>
    %18 = arith.addf %15, %17 : vector<2x512xf32>
    %c0_13 = arith.constant 0 : index
    %c0_14 = arith.constant 0 : index
    %19 = vector.load %arg6[%c0_13, %c0_14] : memref<1x128xf32, #tpu.memory_space<vmem>>, vector<1x128xf32>
    %c0_15 = arith.constant 0 : index
    %c0_16 = arith.constant 0 : index
    %20 = vector.load %arg7[%c0_15, %c0_16] : memref<1x128xf32, #tpu.memory_space<vmem>>, vector<1x128xf32>
    %21 = vector.extract_strided_slice %18 {offsets = [0, 0], sizes = [2, 128], strides = [1, 1]} : vector<2x512xf32> to vector<2x128xf32>
    %cst_17 = arith.constant dense<0.000000e+00> : vector<2xf32>
    %22 = vector.multi_reduction <add>, %21, %cst_17 [1] : vector<2x128xf32> to vector<2xf32>
    %23 = vector.shape_cast %22 : vector<2xf32> to vector<2x1xf32>
    %cst_18 = arith.constant 1.280000e+02 : f32
    %24 = vector.broadcast %cst_18 : f32 to vector<2x1xf32>
    %25 = arith.divf %23, %24 : vector<2x1xf32>
    %26 = vector.broadcast %25 : vector<2x1xf32> to vector<2x128xf32>
    %27 = arith.subf %21, %26 : vector<2x128xf32>
    %28 = arith.mulf %27, %27 : vector<2x128xf32>
    %cst_19 = arith.constant dense<0.000000e+00> : vector<2xf32>
    %29 = vector.multi_reduction <add>, %28, %cst_19 [1] : vector<2x128xf32> to vector<2xf32>
    %30 = vector.shape_cast %29 : vector<2xf32> to vector<2x1xf32>
    %cst_20 = arith.constant 1.280000e+02 : f32
    %31 = vector.broadcast %cst_20 : f32 to vector<2x1xf32>
    %32 = arith.divf %30, %31 : vector<2x1xf32>
    %33 = vector.broadcast %25 : vector<2x1xf32> to vector<2x128xf32>
    %34 = arith.subf %21, %33 : vector<2x128xf32>
    %cst_21 = arith.constant 9.99999974E-6 : f32
    %35 = vector.broadcast %cst_21 : f32 to vector<2x1xf32>
    %36 = arith.addf %32, %35 : vector<2x1xf32>
    %37 = math.rsqrt %36 : vector<2x1xf32>
    %38 = vector.broadcast %37 : vector<2x1xf32> to vector<2x128xf32>
    %39 = arith.mulf %34, %38 : vector<2x128xf32>
    %40 = vector.broadcast %19 : vector<1x128xf32> to vector<2x128xf32>
    %41 = arith.mulf %39, %40 : vector<2x128xf32>
    %42 = vector.broadcast %20 : vector<1x128xf32> to vector<2x128xf32>
    %43 = arith.addf %41, %42 : vector<2x128xf32>
    %c0_22 = arith.constant 0 : index
    %c0_23 = arith.constant 0 : index
    %c0_24 = arith.constant 0 : index
    %44 = vector.load %arg8[%c0_22, %c0_23, %c0_24] : memref<2x4x128xf32, #tpu.memory_space<vmem>>, vector<2x1x128xf32>
    %45 = vector.shape_cast %44 : vector<2x1x128xf32> to vector<2x128xf32>
    %46 = vector.shape_cast %43 : vector<2x128xf32> to vector<2x1x128xf32>
    tpu.vector_store %arg8[%c0_22, %c0_23, %c0_24], %46 {strides = array<i32>} : memref<2x4x128xf32, #tpu.memory_space<vmem>>, vector<2x1x128xf32>,
    %47 = vector.extract_strided_slice %18 {offsets = [0, 128], sizes = [2, 128], strides = [1, 1]} : vector<2x512xf32> to vector<2x128xf32>
    %cst_25 = arith.constant dense<0.000000e+00> : vector<2xf32>
    %48 = vector.multi_reduction <add>, %47, %cst_25 [1] : vector<2x128xf32> to vector<2xf32>
    %49 = vector.shape_cast %48 : vector<2xf32> to vector<2x1xf32>
    %cst_26 = arith.constant 1.280000e+02 : f32
    %50 = vector.broadcast %cst_26 : f32 to vector<2x1xf32>
    %51 = arith.divf %49, %50 : vector<2x1xf32>
    %52 = vector.broadcast %51 : vector<2x1xf32> to vector<2x128xf32>
    %53 = arith.subf %47, %52 : vector<2x128xf32>
    %54 = arith.mulf %53, %53 : vector<2x128xf32>
    %cst_27 = arith.constant dense<0.000000e+00> : vector<2xf32>
    %55 = vector.multi_reduction <add>, %54, %cst_27 [1] : vector<2x128xf32> to vector<2xf32>
    %56 = vector.shape_cast %55 : vector<2xf32> to vector<2x1xf32>
    %cst_28 = arith.constant 1.280000e+02 : f32
    %57 = vector.broadcast %cst_28 : f32 to vector<2x1xf32>
    %58 = arith.divf %56, %57 : vector<2x1xf32>
    %59 = vector.broadcast %51 : vector<2x1xf32> to vector<2x128xf32>
    %60 = arith.subf %47, %59 : vector<2x128xf32>
    %cst_29 = arith.constant 9.99999974E-6 : f32
    %61 = vector.broadcast %cst_29 : f32 to vector<2x1xf32>
    %62 = arith.addf %58, %61 : vector<2x1xf32>
    %63 = math.rsqrt %62 : vector<2x1xf32>
    %64 = vector.broadcast %63 : vector<2x1xf32> to vector<2x128xf32>
    %65 = arith.mulf %60, %64 : vector<2x128xf32>
    %66 = vector.broadcast %19 : vector<1x128xf32> to vector<2x128xf32>
    %67 = arith.mulf %65, %66 : vector<2x128xf32>
    %68 = vector.broadcast %20 : vector<1x128xf32> to vector<2x128xf32>
    %69 = arith.addf %67, %68 : vector<2x128xf32>
    %c0_30 = arith.constant 0 : index
    %c1 = arith.constant 1 : index
    %c0_31 = arith.constant 0 : index
    %70 = vector.load %arg8[%c0_30, %c1, %c0_31] : memref<2x4x128xf32, #tpu.memory_space<vmem>>, vector<2x1x128xf32>
    %71 = vector.shape_cast %70 : vector<2x1x128xf32> to vector<2x128xf32>
    %72 = vector.shape_cast %69 : vector<2x128xf32> to vector<2x1x128xf32>
    tpu.vector_store %arg8[%c0_30, %c1, %c0_31], %72 {strides = array<i32>} : memref<2x4x128xf32, #tpu.memory_space<vmem>>, vector<2x1x128xf32>,
    %73 = vector.extract_strided_slice %18 {offsets = [0, 256], sizes = [2, 128], strides = [1, 1]} : vector<2x512xf32> to vector<2x128xf32>
    %cst_32 = arith.constant dense<0.000000e+00> : vector<2xf32>
    %74 = vector.multi_reduction <add>, %73, %cst_32 [1] : vector<2x128xf32> to vector<2xf32>
    %75 = vector.shape_cast %74 : vector<2xf32> to vector<2x1xf32>
    %cst_33 = arith.constant 1.280000e+02 : f32
    %76 = vector.broadcast %cst_33 : f32 to vector<2x1xf32>
    %77 = arith.divf %75, %76 : vector<2x1xf32>
    %78 = vector.broadcast %77 : vector<2x1xf32> to vector<2x128xf32>
    %79 = arith.subf %73, %78 : vector<2x128xf32>
    %80 = arith.mulf %79, %79 : vector<2x128xf32>
    %cst_34 = arith.constant dense<0.000000e+00> : vector<2xf32>
    %81 = vector.multi_reduction <add>, %80, %cst_34 [1] : vector<2x128xf32> to vector<2xf32>
    %82 = vector.shape_cast %81 : vector<2xf32> to vector<2x1xf32>
    %cst_35 = arith.constant 1.280000e+02 : f32
    %83 = vector.broadcast %cst_35 : f32 to vector<2x1xf32>
    %84 = arith.divf %82, %83 : vector<2x1xf32>
    %85 = vector.broadcast %77 : vector<2x1xf32> to vector<2x128xf32>
    %86 = arith.subf %73, %85 : vector<2x128xf32>
    %cst_36 = arith.constant 9.99999974E-6 : f32
    %87 = vector.broadcast %cst_36 : f32 to vector<2x1xf32>
    %88 = arith.addf %84, %87 : vector<2x1xf32>
    %89 = math.rsqrt %88 : vector<2x1xf32>
    %90 = vector.broadcast %89 : vector<2x1xf32> to vector<2x128xf32>
    %91 = arith.mulf %86, %90 : vector<2x128xf32>
    %92 = vector.broadcast %19 : vector<1x128xf32> to vector<2x128xf32>
    %93 = arith.mulf %91, %92 : vector<2x128xf32>
    %94 = vector.broadcast %20 : vector<1x128xf32> to vector<2x128xf32>
    %95 = arith.addf %93, %94 : vector<2x128xf32>
    %c0_37 = arith.constant 0 : index
    %c2 = arith.constant 2 : index
    %c0_38 = arith.constant 0 : index
    %96 = vector.load %arg8[%c0_37, %c2, %c0_38] : memref<2x4x128xf32, #tpu.memory_space<vmem>>, vector<2x1x128xf32>
    %97 = vector.shape_cast %96 : vector<2x1x128xf32> to vector<2x128xf32>
    %98 = vector.shape_cast %95 : vector<2x128xf32> to vector<2x1x128xf32>
    tpu.vector_store %arg8[%c0_37, %c2, %c0_38], %98 {strides = array<i32>} : memref<2x4x128xf32, #tpu.memory_space<vmem>>, vector<2x1x128xf32>,
    %99 = vector.extract_strided_slice %18 {offsets = [0, 384], sizes = [2, 128], strides = [1, 1]} : vector<2x512xf32> to vector<2x128xf32>
    %cst_39 = arith.constant dense<0.000000e+00> : vector<2xf32>
    %100 = vector.multi_reduction <add>, %99, %cst_39 [1] : vector<2x128xf32> to vector<2xf32>
    %101 = vector.shape_cast %100 : vector<2xf32> to vector<2x1xf32>
    %cst_40 = arith.constant 1.280000e+02 : f32
    %102 = vector.broadcast %cst_40 : f32 to vector<2x1xf32>
    %103 = arith.divf %101, %102 : vector<2x1xf32>
    %104 = vector.broadcast %103 : vector<2x1xf32> to vector<2x128xf32>
    %105 = arith.subf %99, %104 : vector<2x128xf32>
    %106 = arith.mulf %105, %105 : vector<2x128xf32>
    %cst_41 = arith.constant dense<0.000000e+00> : vector<2xf32>
    %107 = vector.multi_reduction <add>, %106, %cst_41 [1] : vector<2x128xf32> to vector<2xf32>
    %108 = vector.shape_cast %107 : vector<2xf32> to vector<2x1xf32>
    %cst_42 = arith.constant 1.280000e+02 : f32
    %109 = vector.broadcast %cst_42 : f32 to vector<2x1xf32>
    %110 = arith.divf %108, %109 : vector<2x1xf32>
    %111 = vector.broadcast %103 : vector<2x1xf32> to vector<2x128xf32>
    %112 = arith.subf %99, %111 : vector<2x128xf32>
    %cst_43 = arith.constant 9.99999974E-6 : f32
    %113 = vector.broadcast %cst_43 : f32 to vector<2x1xf32>
    %114 = arith.addf %110, %113 : vector<2x1xf32>
    %115 = math.rsqrt %114 : vector<2x1xf32>
    %116 = vector.broadcast %115 : vector<2x1xf32> to vector<2x128xf32>
    %117 = arith.mulf %112, %116 : vector<2x128xf32>
    %118 = vector.broadcast %19 : vector<1x128xf32> to vector<2x128xf32>
    %119 = arith.mulf %117, %118 : vector<2x128xf32>
    %120 = vector.broadcast %20 : vector<1x128xf32> to vector<2x128xf32>
    %121 = arith.addf %119, %120 : vector<2x128xf32>
    %c0_44 = arith.constant 0 : index
    %c3 = arith.constant 3 : index
    %c0_45 = arith.constant 0 : index
    %122 = vector.load %arg8[%c0_44, %c3, %c0_45] : memref<2x4x128xf32, #tpu.memory_space<vmem>>, vector<2x1x128xf32>
    %123 = vector.shape_cast %122 : vector<2x1x128xf32> to vector<2x128xf32>
    %124 = vector.shape_cast %121 : vector<2x128xf32> to vector<2x1x128xf32>
    tpu.vector_store %arg8[%c0_44, %c3, %c0_45], %124 {strides = array<i32>} : memref<2x4x128xf32, #tpu.memory_space<vmem>>, vector<2x1x128xf32>,
    return
  }
  func.func @transform_0(%arg0: i32) -> (i32, i32) {
    %c0_i32 = arith.constant 0 : i32
    %c0_i32_0 = arith.constant 0 : i32
    return %arg0, %c0_i32 : i32, i32
  }
  func.func @transform_1(%arg0: i32) -> (i32, i32) {
    %c0_i32 = arith.constant 0 : i32
    %c0_i32_0 = arith.constant 0 : i32
    %c0_i32_1 = arith.constant 0 : i32
    return %c0_i32, %c0_i32_0 : i32, i32
  }
  func.func @transform_2(%arg0: i32) -> (i32, i32) {
    %c0_i32 = arith.constant 0 : i32
    %c0_i32_0 = arith.constant 0 : i32
    %c0_i32_1 = arith.constant 0 : i32
    return %c0_i32, %c0_i32_0 : i32, i32
  }
  func.func @transform_3(%arg0: i32) -> (i32, i32) {
    %c0_i32 = arith.constant 0 : i32
    %c0_i32_0 = arith.constant 0 : i32
    %c0_i32_1 = arith.constant 0 : i32
    return %c0_i32, %c0_i32_0 : i32, i32
  }
  func.func @transform_4(%arg0: i32) -> (i32, i32) {
    %c0_i32 = arith.constant 0 : i32
    %c0_i32_0 = arith.constant 0 : i32
    %c0_i32_1 = arith.constant 0 : i32
    return %c0_i32, %c0_i32_0 : i32, i32
  }
  func.func @transform_5(%arg0: i32) -> (i32, i32) {
    %c0_i32 = arith.constant 0 : i32
    %c0_i32_0 = arith.constant 0 : i32
    %c0_i32_1 = arith.constant 0 : i32
    return %c0_i32, %c0_i32_0 : i32, i32
  }
  func.func @transform_6(%arg0: i32) -> (i32, i32) {
    %c0_i32 = arith.constant 0 : i32
    %c0_i32_0 = arith.constant 0 : i32
    %c0_i32_1 = arith.constant 0 : i32
    return %c0_i32, %c0_i32_0 : i32, i32
  }
  func.func @transform_7(%arg0: i32) -> (i32, i32, i32) {
    %c0_i32 = arith.constant 0 : i32
    %c0_i32_0 = arith.constant 0 : i32
    %c0_i32_1 = arith.constant 0 : i32
    return %arg0, %c0_i32, %c0_i32_0 : i32, i32, i32
  }
}

</mosaic_0001>

<bundles_post_ra>
// kernel: tpu_custom_call.1
= control target key start
LH: loop header
LB: loop body
LE: loop exit
PB: predicated region body
PF: predicated region fallthrough
CT: control target
= control target key end

     0   :  { %12 = vsyncpa [#allocation3], 0  ;;  %s751_s0 = inlined_call_operand.hbm [shape: f32[2,64], index: 0, kind: input, shape index: {}]   ;;  %s752_s1 = inlined_call_operand.hbm [shape: f32[64,128], index: 1, kind: input, shape index: {}]   ;;  %s753_s2 = inlined_call_operand.vmem [shape: f32[1,128], index: 2, kind: input, shape index: {}]   ;;  %s754_s3 = inlined_call_operand.hbm [shape: f32[128,512], index: 3, kind: input, shape index: {}]   ;;  %s755_s4 = inlined_call_operand.hbm [shape: f32[1,512], index: 4, kind: input, shape index: {}]   ;;  %s756_s5 = inlined_call_operand.vmem [shape: f32[1,128], index: 5, kind: input, shape index: {}]   ;;  %s757_s6 = inlined_call_operand.vmem [shape: f32[1,128], index: 6, kind: input, shape index: {}]   ;;  %s758_s7 = inlined_call_operand.hbm [shape: f32[2,4,128], index: 7, kind: output, shape index: {}]  }
   0x1   :  { %13 = vsyncpa [#allocation6], 0 }
   0x2   :  { %14 = vsyncpa [#allocation9], 0  ;;  %s31_s26 = sshll.u32 %s752_s1, 4  ;;  %s32_s26 = int_to_ptr.hbm [resolvable:$true] %s31_s26 }
   0x3   :  { %15 = vsyncpa [#allocation4], 0  ;;  %s631_s27 = smov [#allocation5]   ;;  %s21_s8 = sshll.u32 %s751_s0, 4  ;;  %s22_s8 = int_to_ptr.hbm [resolvable:$true] %s21_s8 }
   0x4   :  { %s33_s28 = sshll.u32 %s631_s27, 4  ;;  %s632_s9 = smov 128   ;;  %s34_s28 = int_to_ptr.vmem [resolvable:$true] %s33_s28 }
   0x5   :  { %s633_s10 = smov 8   ;;  %s634_s11 = smov [#allocation2]  }
   0x6   :  { %39 = dma.hbm_to_vmem [thread:$0]  %s32_s26, 1024, %s34_s28, [#allocation6], %s632_s9, %s632_s9, %s633_s10  }
   0x7   :  { %s23_s12 = sshll.u32 %s634_s11, 4  ;;  %s46_s15 = sshll.u32 %s754_s3, 4  ;;  %s24_s12 = int_to_ptr.vmem [resolvable:$true] %s23_s12  ;;  %s47_s15 = int_to_ptr.hbm [resolvable:$true] %s46_s15 }
   0x8   :  { %26 = dma.hbm_to_vmem [thread:$0]  %s22_s8, 32, %s24_s12, [#allocation3]  }
   0x9   :  { %s635_s1 = smov [#allocation7]   ;;  %s60_s0 = sshll.u32 %s755_s4, 4  ;;  %s61_s0 = int_to_ptr.hbm [resolvable:$true] %s60_s0 }
   0xa   :  { %s48_s16 = sshll.u32 %s635_s1, 4  ;;  %s636_s19 = smov 512   ;;  %s49_s16 = int_to_ptr.vmem [resolvable:$true] %s48_s16 }
   0xb   :  { %s637_s20 = smov 32   ;;  %s638_s21 = smov [#allocation8]  }
   0xc   :  { %54 = dma.hbm_to_vmem [thread:$0]  %s47_s15, 8192, %s49_s16, [#allocation6], %s636_s19, %s636_s19, %s637_s20  }
   0xd   :  { %s62_s22 = sshll.u32 %s638_s21, 4  ;;  %s63_s22 = int_to_ptr.vmem [resolvable:$true] %s62_s22 }
   0xe   :  { %65 = dma.hbm_to_vmem [thread:$0]  %s61_s0, 64, %s63_s22, [#allocation9]  }
   0xf   :  { %623 = dma.done.wait [#allocation3], 32  }
  0x10   :  { %624 = vsyncadd [#allocation3], 4294967264 }
  0x11   :  { %625 = dma.done.wait [#allocation6], 9216  }
  0x12   :  { %626 = vsyncadd [#allocation6], 4294958080 }
  0x13   :  { %627 = dma.done.wait [#allocation9], 64  }
  0x14   :  { %628 = vsyncadd [#allocation9], 4294967232  ;;  %v94_v0 = vld [vmem:[#allocation5 + $0x38] sm:$0xff]  ;;  %v93_v1 = vld [vmem:[#allocation5 + $0x30] sm:$0xff]  ;;  %vm99_vm0 = vcmask 523264   ;;  %vm323_vm5 = vcmask 1041408  }
  0x15   :  { %111 = vmatpush.msra.mxu0 %v94_v0  ;;  %v92_v2 = vld [vmem:[#allocation5 + $0x28] sm:$0xff]  ;;  %v91_v3 = vld [vmem:[#allocation5 + $0x20] sm:$0xff]  ;;  %v90_v4 = vld [vmem:[#allocation5 + $0x18] sm:$0xff]  ;;  %s459_s28 = sshll.u32 %s758_s7, 4  ;;  %s641_s29 = smov 64   ;;  %s460_s28 = int_to_ptr.hbm [resolvable:$true] %s459_s28 }
  0x16   :  { %v89_v5 = vld [vmem:[#allocation5 + $0x10] sm:$0xff]  ;;  %v88_v6 = vld [vmem:[#allocation5 + $0x8] sm:$0xff]  ;;  %v87_v7 = vld [vmem:[#allocation5] sm:$0xff]  ;;  %s642_s30 = smov 4  }
  0x17   :  { %112 = vmatpush.msra.mxu0 %v93_v1  ;;  %v86_v8 = vld [vmem:[#allocation2] sm:$0x3]  ;;  %v227_v9 = vld [vmem:[#allocation7 + $0x1e0] sm:$0xff]  ;;  %v228_v10 = vld [vmem:[#allocation7 + $0x1e8] sm:$0xff] }
  0x18   :  { %v229_v11 = vld [vmem:[#allocation7 + $0x1f0] sm:$0xff]  ;;  %241 = vmatpush.msra.mxu1 %v227_v9  ;;  %261 = vmatpush.msra.mxu2 %v228_v10  ;;  %v230_v12 = vld [vmem:[#allocation7 + $0x1f8] sm:$0xff]  ;;  %v223_v13 = vld [vmem:[#allocation7 + $0x1c0] sm:$0xff] }
  0x19   :  { %113 = vmatpush.msra.mxu0 %v92_v2  ;;  %281 = vmatpush.msra.mxu3 %v229_v11  ;;  %v224_v14 = vld [vmem:[#allocation7 + $0x1c8] sm:$0xff]  ;;  %v225_v15 = vld [vmem:[#allocation7 + $0x1d0] sm:$0xff]  ;;  %v226_v16 = vld [vmem:[#allocation7 + $0x1d8] sm:$0xff] }
  0x1a   :  { %242 = vmatpush.msra.mxu1 %v223_v13  ;;  %262 = vmatpush.msra.mxu2 %v224_v14  ;;  %v219_v17 = vld [vmem:[#allocation7 + $0x1a0] sm:$0xff]  ;;  %v220_v18 = vld [vmem:[#allocation7 + $0x1a8] sm:$0xff]  ;;  %v221_v19 = vld [vmem:[#allocation7 + $0x1b0] sm:$0xff] }
  0x1b   :  { %114 = vmatpush.msra.mxu0 %v91_v3  ;;  %282 = vmatpush.msra.mxu3 %v225_v15  ;;  %v488_v20 = vld [vmem:[%s753_s2] ss:$0 sm:$0xff]  ;;  %v215_v22 = vld [vmem:[#allocation7 + $0x180] sm:$0xff]  ;;  %v216_v23 = vld [vmem:[#allocation7 + $0x188] sm:$0xff] }
  0x1c   :  { %243 = vmatpush.msra.mxu1 %v219_v17  ;;  %263 = vmatpush.msra.mxu2 %v220_v18  ;;  %v222_v21 = vld [vmem:[#allocation7 + $0x1b8] sm:$0xff]  ;;  %v217_v24 = vld [vmem:[#allocation7 + $0x190] sm:$0xff]  ;;  %v211_v26 = vld [vmem:[#allocation7 + $0x160] sm:$0xff] }
  0x1d   :  { %115 = vmatpush.msra.mxu0 %v90_v4  ;;  %283 = vmatpush.msra.mxu3 %v221_v19  ;;  %v218_v25 = vld [vmem:[#allocation7 + $0x198] sm:$0xff]  ;;  %v212_v27 = vld [vmem:[#allocation7 + $0x168] sm:$0xff]  ;;  %v213_v28 = vld [vmem:[#allocation7 + $0x170] sm:$0xff] }
  0x1e   :  { %244 = vmatpush.msra.mxu1 %v215_v22  ;;  %264 = vmatpush.msra.mxu2 %v216_v23  ;;  %v214_v30 = vld [vmem:[#allocation7 + $0x178] sm:$0xff]  ;;  %v207_v32 = vld [vmem:[#allocation7 + $0x140] sm:$0xff]  ;;  %v208_v33 = vld [vmem:[#allocation7 + $0x148] sm:$0xff] }
  0x1f   :  { %116 = vmatpush.msra.mxu0 %v89_v5  ;;  %284 = vmatpush.msra.mxu3 %v217_v24  ;;  %v209_v34 = vld [vmem:[#allocation7 + $0x150] sm:$0xff]  ;;  %v210_v35 = vld [vmem:[#allocation7 + $0x158] sm:$0xff]  ;;  %v203_v37 = vld [vmem:[#allocation7 + $0x120] sm:$0xff] }
  0x20   :  { %245 = vmatpush.msra.mxu1 %v211_v26  ;;  %265 = vmatpush.msra.mxu2 %v212_v27  ;;  %v204_v38 = vld [vmem:[#allocation7 + $0x128] sm:$0xff]  ;;  %v205_v39 = vld [vmem:[#allocation7 + $0x130] sm:$0xff]  ;;  %v206_v40 = vld [vmem:[#allocation7 + $0x138] sm:$0xff] }
  0x21   :  { %117 = vmatpush.msra.mxu0 %v88_v6  ;;  %285 = vmatpush.msra.mxu3 %v213_v28  ;;  %v199_v42 = vld [vmem:[#allocation7 + $0x100] sm:$0xff]  ;;  %v200_v43 = vld [vmem:[#allocation7 + $0x108] sm:$0xff]  ;;  %v201_v44 = vld [vmem:[#allocation7 + $0x110] sm:$0xff] }
  0x22   :  { %246 = vmatpush.msra.mxu1 %v207_v32  ;;  %266 = vmatpush.msra.mxu2 %v208_v33  ;;  %v202_v45 = vld [vmem:[#allocation7 + $0x118] sm:$0xff]  ;;  %v195_v47 = vld [vmem:[#allocation7 + $0xe0] sm:$0xff]  ;;  %v196_v48 = vld [vmem:[#allocation7 + $0xe8] sm:$0xff] }
  0x23   :  { %118 = vmatpush.msra.mxu0 %v87_v7  ;;  %286 = vmatpush.msra.mxu3 %v209_v34  ;;  %v197_v49 = vld [vmem:[#allocation7 + $0xf0] sm:$0xff]  ;;  %v198_v50 = vld [vmem:[#allocation7 + $0xf8] sm:$0xff]  ;;  %v191_v53 = vld [vmem:[#allocation7 + $0xc0] sm:$0xff] }
  0x24   :  { %474 = vmatmul.msk.f32.vlgmr.msra.gmra.mxu0 %vm99_vm0, %v86_v8  ;;  %247 = vmatpush.msra.mxu1 %v203_v37  ;;  %v192_v54 = vld [vmem:[#allocation7 + $0xc8] sm:$0xff]  ;;  %v193_v55 = vld [vmem:[#allocation7 + $0xd0] sm:$0xff]  ;;  %v194_v56 = vld [vmem:[#allocation7 + $0xd8] sm:$0xff] }
  0x25   :  { %301 = vmatpush.msrb.mxu0 %v230_v12  ;;  %267 = vmatpush.msra.mxu2 %v204_v38  ;;  %v187_v59 = vld [vmem:[#allocation7 + $0xa0] sm:$0xff]  ;;  %v188_v60 = vld [vmem:[#allocation7 + $0xa8] sm:$0xff]  ;;  %v189_v61 = vld [vmem:[#allocation7 + $0xb0] sm:$0xff] }
  0x26   :  { %287 = vmatpush.msra.mxu3 %v205_v39  ;;  %248 = vmatpush.msra.mxu1 %v199_v42  ;;  %v190_v62 = vld [vmem:[#allocation7 + $0xb8] sm:$0xff]  ;;  %v183_v1 = vld [vmem:[#allocation7 + $0x80] sm:$0xff]  ;;  %v184_v2 = vld [vmem:[#allocation7 + $0x88] sm:$0xff] }
  0x27   :  { %302 = vmatpush.msrb.mxu0 %v226_v16  ;;  %268 = vmatpush.msra.mxu2 %v200_v43  ;;  %v185_v3 = vld [vmem:[#allocation7 + $0x90] sm:$0xff]  ;;  %v186_v4 = vld [vmem:[#allocation7 + $0x98] sm:$0xff]  ;;  %v179_v6 = vld [vmem:[#allocation7 + $0x60] sm:$0xff] }
  0x28   :  { %288 = vmatpush.msra.mxu3 %v201_v44  ;;  %249 = vmatpush.msra.mxu1 %v195_v47  ;;  %v180_v7 = vld [vmem:[#allocation7 + $0x68] sm:$0xff]  ;;  %v181_v9 = vld [vmem:[#allocation7 + $0x70] sm:$0xff]  ;;  %v182_v10 = vld [vmem:[#allocation7 + $0x78] sm:$0xff] }
  0x29   :  { %303 = vmatpush.msrb.mxu0 %v222_v21  ;;  %269 = vmatpush.msra.mxu2 %v196_v48  ;;  %v175_v12 = vld [vmem:[#allocation7 + $0x40] sm:$0xff]  ;;  %v176_v13 = vld [vmem:[#allocation7 + $0x48] sm:$0xff]  ;;  %v177_v14 = vld [vmem:[#allocation7 + $0x50] sm:$0xff] }
  0x2a   :  { %289 = vmatpush.msra.mxu3 %v197_v49  ;;  %250 = vmatpush.msra.mxu1 %v191_v53  ;;  %v178_v15 = vld [vmem:[#allocation7 + $0x58] sm:$0xff]  ;;  %v171_v17 = vld [vmem:[#allocation7 + $0x20] sm:$0xff]  ;;  %v172_v18 = vld [vmem:[#allocation7 + $0x28] sm:$0xff] }
  0x2b   :  { %304 = vmatpush.msrb.mxu0 %v218_v25  ;;  %270 = vmatpush.msra.mxu2 %v192_v54  ;;  %v174_v21 = vld [vmem:[#allocation7 + $0x38] sm:$0xff]  ;;  %v167_v22 = vld [vmem:[#allocation7] sm:$0xff]  ;;  %v168_v24 = vld [vmem:[#allocation7 + $0x8] sm:$0xff] }
  0x2c   :  { %290 = vmatpush.msra.mxu3 %v193_v55  ;;  %251 = vmatpush.msra.mxu1 %v187_v59  ;;  %v169_v25 = vld [vmem:[#allocation7 + $0x10] sm:$0xff]  ;;  %v170_v26 = vld [vmem:[#allocation7 + $0x18] sm:$0xff]  ;;  %v231_v53 = vld [vmem:[#allocation8] sm:$0xf] }
  0x2d   :  { %305 = vmatpush.msrb.mxu0 %v214_v30  ;;  %271 = vmatpush.msra.mxu2 %v188_v60  ;;  %v233_v54 = vperm.slane %v231_v53, 0 }
  0x2e   :  { %291 = vmatpush.msra.mxu3 %v189_v61  ;;  %252 = vmatpush.msra.mxu1 %v183_v1 }
  0x2f   :  { %306 = vmatpush.msrb.mxu0 %v210_v35  ;;  %272 = vmatpush.msra.mxu2 %v184_v2 }
  0x30   :  { %292 = vmatpush.msra.mxu3 %v185_v3  ;;  %253 = vmatpush.msra.mxu1 %v179_v6 }
  0x31   :  { %307 = vmatpush.msrb.mxu0 %v206_v40  ;;  %273 = vmatpush.msra.mxu2 %v180_v7 }
  0x32   :  { %293 = vmatpush.msra.mxu3 %v181_v9  ;;  %254 = vmatpush.msra.mxu1 %v175_v12 }
  0x33   :  { %308 = vmatpush.msrb.mxu0 %v202_v45  ;;  %274 = vmatpush.msra.mxu2 %v176_v13 }
  0x34   :  { %294 = vmatpush.msra.mxu3 %v177_v14  ;;  %255 = vmatpush.msra.mxu1 %v171_v17 }
  0x35   :  { %309 = vmatpush.msrb.mxu0 %v198_v50  ;;  %275 = vmatpush.msra.mxu2 %v172_v18 }
  0x36   :  { %256 = vmatpush.msra.mxu1 %v167_v22 }
  0x37   :  { %310 = vmatpush.msrb.mxu0 %v194_v56  ;;  %276 = vmatpush.msra.mxu2 %v168_v24 }
  0x39   :  { %311 = vmatpush.msrb.mxu0 %v190_v62  ;;  %v236_v62 = vperm.slane %v231_v53, 3 }
  0x3b   :  { %312 = vmatpush.msrb.mxu0 %v186_v4  ;;  %v639_v4 = vmov 128.0  }
  0x3d   :  { %313 = vmatpush.msrb.mxu0 %v182_v10 }
  0x3f   :  { %314 = vmatpush.msrb.mxu0 %v178_v15 }
  0x41   :  { %315 = vmatpush.msrb.mxu0 %v174_v21 }
  0x43   :  { %316 = vmatpush.msrb.mxu0 %v170_v26 }
  0xa1   :  { %v120_v29 = vpop.f32.mrf.mxu0 }
  0xa2   :  { %v698_v31 = vadd.f32 %v488_v20, %v120_v29  ;;  %v173_v20 = vld [vmem:[#allocation7 + $0x30] sm:$0xff] }
  0xa3   :  { %295 = vmatpush.msra.mxu3 %v173_v20 }
  0xa4   :  { %v701_v36 = vmul.f32 0.70710677, %v698_v31 }
  0xa5   :  { %296 = vmatpush.msra.mxu3 %v169_v25 }
  0xa6   :  { %v125_v41 = vmul.f32 %v701_v36, %v701_v36 }
  0xa8   :  { %v705_v46 = vmin.f32 %v125_v41, 16.0 }
  0xaa   :  { %v127_v51 = vmul.f32 2.1237322e-06, %v705_v46  ;;  %v138_v52 = vmul.f32 3.8918573e-05, %v705_v46 }
  0xac   :  { %v128_v57 = vadd.f32 0.00028619796, %v127_v51  ;;  %v139_v58 = vadd.f32 0.001143296, %v138_v52 }
  0xae   :  { %v129_v63 = vmul.f32 %v128_v57, %v705_v46  ;;  %v140_v0 = vmul.f32 %v139_v58, %v705_v46  ;;  %v234_v57 = vperm.slane %v231_v53, 1  ;;  %v235_v58 = vperm.slane %v231_v53, 2 }
  0xb0   :  { %v141_v5 = vadd.f32 0.014752088, %v140_v0  ;;  %v130_v8 = vadd.f32 0.0036580483, %v129_v63 }
  0xb2   :  { %v142_v11 = vmul.f32 %v141_v5, %v705_v46  ;;  %v131_v19 = vmul.f32 %v130_v8, %v705_v46 }
  0xb4   :  { %v143_v16 = vadd.f32 0.112945676, %v142_v11  ;;  %v132_v28 = vadd.f32 0.05243302, %v131_v19 }
  0xb6   :  { %v144_v23 = vmul.f32 %v143_v16, %v705_v46  ;;  %v133_v32 = vmul.f32 %v132_v28, %v705_v46 }
  0xb8   :  { %v145_v27 = vadd.f32 0.4994258, %v144_v23  ;;  %v134_v33 = vadd.f32 0.18741608, %v133_v32 }
  0xba   :  { %v146_v29 = vmul.f32 %v145_v27, %v705_v46  ;;  %v135_v35 = vmul.f32 %v134_v33, %v705_v46  ;;  %v123_v46 = vmul.f32 0.5, %v698_v31 }
  0xbc   :  { %v147_v30 = vadd.f32 1.0, %v146_v29  ;;  %v136_v40 = vadd.f32 1.1283791, %v135_v35 }
  0xbe   :  { %491 = vrcp.f32 %v147_v30  ;;  %v159_v39 = vand.u32 2147483648, %v147_v30  ;;  %v157_v42 = vand.u32 2147483647, %v147_v30  ;;  %vm153_vm2 = vweird.f32 %v147_v30 }
  0xbf   :  { %v137_v45 = vmul.f32 %v136_v40, %v701_v36  ;;  %493 = vrcp.f32 %v639_v4 }
  0xc0   :  { %v160_v44 = vor.u32 1.1754944e-38, %v159_v39  ;;  %vm158_vm4 = vcmp.eq.f32.partialorder %v157_v42, 8.507059e+37 }
  0xc4   :  { %v492_v34 = vpop.eup %491 }
  0xc5   :  { %v149_v37 = vmul.f32 %v492_v34, %v147_v30  ;;  %vm154_vm1 = vweird.f32 %v492_v34  ;;  %v494_v5 = vpop.eup %493 }
  0xc6   :  { %vm155_vm3 = vmor %vm153_vm2, %vm154_vm1  ;;  %v328_v6 = vmul.f32 128.0, %v494_v5  ;;  %vm332_vm6 = vweird.f32 %v494_v5 }
  0xc7   :  { %v150_v38 = vsub.f32 1.0, %v149_v37 }
  0xc8   :  { %v329_v7 = vsub.f32 1.0, %v328_v6 }
  0xc9   :  { %v151_v41 = vmul.f32 %v492_v34, %v150_v38 }
  0xca   :  { %v330_v8 = vmul.f32 %v494_v5, %v329_v7 }
  0xcb   :  { %v152_v43 = vadd.f32 %v492_v34, %v151_v41 }
  0xcc   :  { %v331_v9 = vadd.f32 %v494_v5, %v330_v8 }
  0xcd   :  { %v156_v47 = vsel %vm155_vm3, %v492_v34, %v152_v43 }
  0xce   :  { %v161_v48 = vsel %vm158_vm4, %v160_v44, %v156_v47  ;;  %v333_v10 = vsel %vm332_vm6, %v494_v5, %v331_v9 }
  0xcf   :  { %v162_v49 = vmul.f32 %v161_v48, %v137_v45 }
  0xd1   :  { %v475_v50 = vclamps-f32 %v162_v49, 1.0 }
  0xd3   :  { %v165_v51 = vadd.f32 1.0, %v475_v50 }
  0xd5   :  { %v166_v52 = vmul.f32 %v165_v51, %v123_v46 }
  0xd7   :  { %257 = vmatmul.f32.vlgmr.msra.gmra.mxu1 %v166_v52  ;;  %277 = vmatmul.f32.vlgmr.msra.gmra.mxu2 %v166_v52 }
  0xd8   :  { %297 = vmatmul.f32.vlgmr.msra.gmra.mxu3 %v166_v52  ;;  %317 = vmatmul.f32.vlgmr.msrb.gmra.mxu0 %v166_v52 }
 0x154   :  { %v258_v55 = vpop.f32.mrf.mxu1 }
 0x155   :  { %v259_v56 = vadd.f32 %v258_v55, %v233_v54  ;;  %v318_v0 = vpop.f32.mrf.mxu0  ;;  %v489_v55 = vld [vmem:[%s756_s5] ss:$0 sm:$0xff]  ;;  %s640_s5 = smov [#allocation10]  }
 0x156   :  { %v319_v2 = vadd.f32 %v318_v0, %v236_v62 }
 0x157   :  { %v324_v36 = vsel %vm323_vm5, %v259_v56, 0.0 }
 0x158   :  { %325 = vadd.xlane.f32.xlu0 %v324_v36  ;;  %v424_v3 = vsel %vm323_vm5, %v319_v2, 0.0 }
 0x15a   :  { %v278_v59 = vpop.f32.mrf.mxu2 }
 0x15b   :  { %v279_v60 = vadd.f32 %v278_v59, %v234_v57  ;;  %v298_v61 = vpop.f32.mrf.mxu3 }
 0x15c   :  { %v299_v31 = vadd.f32 %v298_v61, %v235_v58  ;;  %v490_v58 = vld [vmem:[%s757_s6] ss:$0 sm:$0xff]  ;;  %s457_s6 = sshll.u32 %s640_s5, 4  ;;  %s458_s6 = int_to_ptr.vmem [resolvable:$true] %s457_s6 }
 0x15d   :  { %v366_v1 = vsel %vm323_vm5, %v279_v60, 0.0 }
 0x15e   :  { %v395_v63 = vsel %vm323_vm5, %v299_v31, 0.0 }
 0x15f   :  { %396 = vadd.xlane.f32.xlu1 %v395_v63 }
 0x160   :  { %367 = vadd.xlane.f32.xlu0 %v366_v1 }
 0x167   :  { %425 = vadd.xlane.f32.xlu1 %v424_v3 }
 0x1cb   :  { %v326_v11 = vpop.xlane.xlu0 %325 }
 0x1cc   :  { %v334_v12 = vmul.f32 %v333_v10, %v326_v11 }
 0x1ce   :  { %v335_v13 = vsub.f32 %v259_v56, %v334_v12 }
 0x1d0   :  { %v336_v14 = vmul.f32 %v335_v13, %v335_v13 }
 0x1d2   :  { %v397_v15 = vpop.xlane.xlu1 %396  ;;  %v337_v16 = vsel %vm323_vm5, %v336_v14, 0.0 }
 0x1d3   :  { %v398_v17 = vmul.f32 %v397_v15, %v333_v10  ;;  %338 = vadd.xlane.f32.xlu2 %v337_v16  ;;  %v368_v18 = vpop.xlane.xlu0 %367 }
 0x1d4   :  { %v369_v19 = vmul.f32 %v368_v18, %v333_v10 }
 0x1d5   :  { %v724_v20 = vsub.f32 %v299_v31, %v398_v17 }
 0x1d6   :  { %v726_v21 = vsub.f32 %v279_v60, %v369_v19 }
 0x1d7   :  { %v400_v22 = vmul.f32 %v724_v20, %v724_v20 }
 0x1d8   :  { %v371_v23 = vmul.f32 %v726_v21, %v726_v21 }
 0x1d9   :  { %v401_v24 = vsel %vm323_vm5, %v400_v22, 0.0 }
 0x1da   :  { %v426_v25 = vpop.xlane.xlu1 %425  ;;  %402 = vadd.xlane.f32.xlu0 %v401_v24  ;;  %v372_v26 = vsel %vm323_vm5, %v371_v23, 0.0 }
 0x1db   :  { %v427_v27 = vmul.f32 %v426_v25, %v333_v10  ;;  %373 = vadd.xlane.f32.xlu2 %v372_v26 }
 0x1dd   :  { %v734_v28 = vsub.f32 %v319_v2, %v427_v27 }
 0x1df   :  { %v429_v29 = vmul.f32 %v734_v28, %v734_v28 }
 0x1e1   :  { %v430_v30 = vsel %vm323_vm5, %v429_v29, 0.0 }
 0x1e2   :  { %431 = vadd.xlane.f32.xlu1 %v430_v30 }
 0x246   :  { %v339_v32 = vpop.xlane.xlu2 %338 }
 0x247   :  { %v340_v33 = vmul.f32 %v339_v32, %v333_v10 }
 0x249   :  { %v341_v34 = vadd.f32 1e-05, %v340_v33 }
 0x24b   :  { %495 = vrsqrt.f32 %v341_v34  ;;  %vm348_vm8 = vweird.f32 %v341_v34 }
 0x24d   :  { %v403_v35 = vpop.xlane.xlu0 %402 }
 0x24e   :  { %v404_v37 = vmul.f32 %v403_v35, %v333_v10  ;;  %v374_v38 = vpop.xlane.xlu2 %373 }
 0x24f   :  { %v375_v39 = vmul.f32 %v374_v38, %v333_v10 }
 0x250   :  { %v405_v40 = vadd.f32 1e-05, %v404_v37 }
 0x251   :  { %v496_v41 = vpop.eup %495  ;;  %v376_v42 = vadd.f32 1e-05, %v375_v39 }
 0x252   :  { %v343_v43 = vmul.f32 %v496_v41, %v341_v34  ;;  %497 = vrsqrt.f32 %v405_v40  ;;  %vm349_vm7 = vweird.f32 %v496_v41  ;;  %vm412_vm12 = vweird.f32 %v405_v40 }
 0x253   :  { %499 = vrsqrt.f32 %v376_v42  ;;  %vm350_vm9 = vmor %vm348_vm8, %vm349_vm7  ;;  %vm383_vm14 = vweird.f32 %v376_v42 }
 0x254   :  { %v344_v44 = vmul.f32 %v496_v41, %v343_v43 }
 0x255   :  { %v432_v45 = vpop.xlane.xlu1 %431 }
 0x256   :  { %v345_v47 = vmul.f32 0.5, %v344_v44  ;;  %v433_v48 = vmul.f32 %v432_v45, %v333_v10 }
 0x258   :  { %v498_v49 = vpop.eup %497  ;;  %v346_v50 = vsub.f32 1.5, %v345_v47  ;;  %v434_v46 = vadd.f32 1e-05, %v433_v48 }
 0x259   :  { %v500_v51 = vpop.eup %499  ;;  %v407_v52 = vmul.f32 %v498_v49, %v405_v40  ;;  %vm413_vm10 = vweird.f32 %v498_v49 }
 0x25a   :  { %v347_v53 = vmul.f32 %v496_v41, %v346_v50  ;;  %v378_v54 = vmul.f32 %v500_v51, %v376_v42  ;;  %501 = vrsqrt.f32 %v434_v46  ;;  %vm384_vm11 = vweird.f32 %v500_v51  ;;  %vm414_vm13 = vmor %vm412_vm12, %vm413_vm10 }
 0x25b   :  { %v408_v56 = vmul.f32 %v498_v49, %v407_v52  ;;  %vm385_vm15 = vmor %vm383_vm14, %vm384_vm11  ;;  %vm441_vm1 = vweird.f32 %v434_v46 }
 0x25c   :  { %v351_v36 = vsel %vm350_vm9, %v496_v41, %v347_v53  ;;  %v379_v57 = vmul.f32 %v500_v51, %v378_v54 }
 0x25d   :  { %v352_v59 = vmul.f32 %v351_v36, %v335_v13  ;;  %v409_v60 = vmul.f32 0.5, %v408_v56 }
 0x25e   :  { %v380_v61 = vmul.f32 0.5, %v379_v57 }
 0x25f   :  { %v356_v31 = vmul.f32 %v489_v55, %v352_v59  ;;  %v410_v62 = vsub.f32 1.5, %v409_v60 }
 0x260   :  { %v502_v63 = vpop.eup %501  ;;  %v381_v0 = vsub.f32 1.5, %v380_v61 }
 0x261   :  { %v360_v1 = vadd.f32 %v490_v58, %v356_v31  ;;  %v411_v2 = vmul.f32 %v498_v49, %v410_v62  ;;  %v436_v3 = vmul.f32 %v502_v63, %v434_v46  ;;  %vm442_vm0 = vweird.f32 %v502_v63 }
 0x262   :  { %v382_v4 = vmul.f32 %v500_v51, %v381_v0  ;;  %vm443_vm2 = vmor %vm441_vm1, %vm442_vm0 }
 0x263   :  { %v362_v5 = vrot.slane %v360_v1, 1  ;;  %364 = vst [vmem:[#allocation10] sm:$0x1] %v360_v1  ;;  %v415_v6 = vsel %vm414_vm13, %v498_v49, %v411_v2  ;;  %v437_v7 = vmul.f32 %v502_v63, %v436_v3 }
 0x264   :  { %v416_v8 = vmul.f32 %v415_v6, %v724_v20  ;;  %v386_v9 = vsel %vm385_vm15, %v500_v51, %v382_v4 }
 0x265   :  { %365 = vst [vmem:[#allocation10 + $0x4] sm:$0x1] %v362_v5  ;;  %v387_v10 = vmul.f32 %v386_v9, %v726_v21  ;;  %v438_v11 = vmul.f32 0.5, %v437_v7 }
 0x266   :  { %v417_v12 = vmul.f32 %v489_v55, %v416_v8 }
 0x267   :  { %v388_v13 = vmul.f32 %v489_v55, %v387_v10  ;;  %v439_v14 = vsub.f32 1.5, %v438_v11 }
 0x268   :  { %v418_v15 = vadd.f32 %v490_v58, %v417_v12 }
 0x269   :  { %v389_v16 = vadd.f32 %v490_v58, %v388_v13  ;;  %v440_v17 = vmul.f32 %v502_v63, %v439_v14 }
 0x26a   :  { %v420_v18 = vrot.slane %v418_v15, 1  ;;  %422 = vst [vmem:[#allocation10 + $0x2] sm:$0x1] %v418_v15 }
 0x26b   :  { %v391_v19 = vrot.slane %v389_v16, 1  ;;  %393 = vst [vmem:[#allocation10 + $0x1] sm:$0x1] %v389_v16  ;;  %v444_v22 = vsel %vm443_vm2, %v502_v63, %v440_v17 }
 0x26c   :  { %423 = vst [vmem:[#allocation10 + $0x6] sm:$0x1] %v420_v18  ;;  %v445_v20 = vmul.f32 %v444_v22, %v734_v28 }
 0x26d   :  { %394 = vst [vmem:[#allocation10 + $0x5] sm:$0x1] %v391_v19 }
 0x26e   :  { %v446_v21 = vmul.f32 %v489_v55, %v445_v20 }
 0x270   :  { %v447_v23 = vadd.f32 %v490_v58, %v446_v21 }
 0x272   :  { %v449_v24 = vrot.slane %v447_v23, 1  ;;  %451 = vst [vmem:[#allocation10 + $0x3] sm:$0x1] %v447_v23 }
 0x274   :  { %452 = vst [vmem:[#allocation10 + $0x7] sm:$0x1] %v449_v24 }
 0x275   :  { %465 = dma.vmem_to_hbm [thread:$0]  %s458_s6, 128, %s460_s28, [#allocation4], %s641_s29, %s641_s29, %s642_s30  }
 0x276   :  { %629 = dma.done.wait [#allocation4], 128  }
 0x277   :  { %630 = vsyncadd [#allocation4], 4294967168 }
 0x278   :  { %470 = vsyncpa [#allocation3], 1 }
 0x279   :  { %471 = vsyncpa [#allocation6], 1 }
 0x27a   :  { %472 = vsyncpa [#allocation9], 1 }
 0x27b   :  { %473 = vsyncpa [#allocation4], 1 }

</bundles_post_ra>
